<compile_context>
chip_gen: v7x
topology: tpu7x:2x2x1
jax: 0.10.0
libtpu: 0.0.40
codegen_flags: <defaults>
</compile_context>

<pallas_src>
import functools

import jax
import jax.numpy as jnp
import numpy as np
from jax.experimental import pallas as pl
from jax.experimental.pallas import tpu as pltpu


def _conv3x3_sigmoid_store(s, m, mask_ref, w_ref, o_ref, *, w, hw):
    """3x3 'SAME' conv on the flattened spatial axis + sigmoid + dense store.

    s, m     : (bt, hw) f32 channel-sum / channel-max maps
    mask_ref : (4, hw)  f32 {0,1} masks [col>=1, col<=W-2, row>=1, row<=H-2]
    w_ref    : (18,)    f32 SMEM [avg-branch(9, pre-scaled by 1/C), max-branch(9)]
    """
    cl = mask_ref[0:1, :]          # left  neighbour valid (dj = -1)
    cr = mask_ref[1:2, :]          # right neighbour valid (dj = +1)
    ru = mask_ref[2:3, :]          # up    neighbour valid (di = -1)
    rd = mask_ref[3:4, :]          # down  neighbour valid (di = +1)

    # Column-shifted, column-masked maps: 4 XLU rolls + 4 mask multiplies.
    s_l = pltpu.roll(s, shift=1, axis=1) * cl          # s[p-1]
    s_r = pltpu.roll(s, shift=hw - 1, axis=1) * cr     # s[p+1]
    m_l = pltpu.roll(m, shift=1, axis=1) * cl
    m_r = pltpu.roll(m, shift=hw - 1, axis=1) * cr

    # All 18 weights read once from SMEM (hoisted scalar broadcasts).
    wa = [w_ref[k] for k in range(9)]        # avg-branch (already * 1/C)
    wm = [w_ref[9 + k] for k in range(9)]    # max-branch

    def row_taps(di):
        k0 = (di + 1) * 3                    # taps (di, dj=-1..+1)
        return (wa[k0] * s_l + wa[k0 + 1] * s + wa[k0 + 2] * s_r
                + wm[k0] * m_l + wm[k0 + 1] * m + wm[k0 + 2] * m_r)

    t_up, t_mid, t_dn = row_taps(-1), row_taps(0), row_taps(1)

    # Row shifts: 2 more XLU rolls + 2 row masks.
    acc = (t_mid
           + pltpu.roll(t_up, shift=w, axis=1) * ru        # T_{-1}[p - W]
           + pltpu.roll(t_dn, shift=hw - w, axis=1) * rd)  # T_{+1}[p + W]
    o_ref[...] = jax.nn.sigmoid(acc).astype(o_ref.dtype)


def _spatial_attention_kernel(x_ref, mask_ref, w_ref, o_ref, *acc_refs,
                              w, hw, c_blk, n_c):
    """x_ref: (bt, c_blk*hw) VMEM; mask_ref: (4, hw) VMEM; w_ref: (18,) SMEM;
    o_ref: (bt, hw) VMEM; acc_refs: () or (sum, max) VMEM scratch (n_c > 1)."""
    # Fused single-pass channel sum + max over lane-dense per-channel slabs
    # (aligned lane slices; f32 accumulation, one cast per slab, no relayout).
    x0 = x_ref[:, 0:hw].astype(jnp.float32)
    s = x0
    m = x0
    for ci in range(1, c_blk):
        xc = x_ref[:, ci * hw:(ci + 1) * hw].astype(jnp.float32)
        s = s + xc
        m = jnp.maximum(m, xc)

    if n_c == 1:
        # Whole channel axis resident -> no accumulator round-trip.
        _conv3x3_sigmoid_store(s, m, mask_ref, w_ref, o_ref, w=w, hw=hw)
    else:
        # Channel grid axis (reduction, last, 'arbitrary'): accumulate in VMEM.
        s_ref, m_ref = acc_refs
        c_idx = pl.program_id(1)

        @pl.when(c_idx == 0)
        def _():
            s_ref[...] = s
            m_ref[...] = m

        @pl.when(c_idx > 0)
        def _():
            s_ref[...] = s_ref[...] + s
            m_ref[...] = jnp.maximum(m_ref[...], m)

        @pl.when(c_idx == n_c - 1)
        def _():
            _conv3x3_sigmoid_store(s_ref[...], m_ref[...], mask_ref, w_ref,
                                   o_ref, w=w, hw=hw)


def spatial_attention(x, weight, *, block_b=None, c_block=None):
    """x: (B, C, H, W); weight: (1, 2, 3, 3) OIHW conv weight (bias-free)."""
    B, C, H, W = x.shape
    HW = H * W
    itemsize = x.dtype.itemsize

    # Lane-dense view: channels + flattened space on the lane axis (free reshape).
    # NOTE: HW a multiple of 128 keeps loads/stores fully lane-dense.
    x2 = x.reshape(B, C * HW)

    # Fold the 1/C of the channel mean into the avg-branch conv weights.
    wf = weight.astype(jnp.float32)
    w_flat = jnp.concatenate([wf[0, 0].reshape(-1) / float(C),
                              wf[0, 1].reshape(-1)])                     # (18,)

    # 3x3 SAME-conv edge masks baked at trace time (H, W are static ints).
    col = np.arange(HW, dtype=np.int64) % W
    row = np.arange(HW, dtype=np.int64) // W
    masks = jnp.asarray(np.stack([col >= 1, col <= W - 2,
                                  row >= 1, row <= H - 2]).astype(np.float32))

    # ---- generation-aware tile sizing -----------------------------------
    try:
        vmem_cap = int(pltpu.get_tpu_info().vmem_capacity_bytes)
    except Exception:                        # interpret mode / lookup failure
        vmem_cap = 64 * 1024 * 1024          # conservative (v7x per-core)
    sub = 8 * max(1, 4 // itemsize)          # sublane multiple: 8 f32 / 16 bf16
    in_budget = min(vmem_cap // 8, 4 * 1024 * 1024)    # double-buffered input block
    sp_budget = min(vmem_cap // 32, 1 * 1024 * 1024)   # one f32 (block_b, HW) temp

    # Channels per grid step: whole C when a minimal batch slab fits VMEM,
    # else an even divisor of C (channel reduction axis added to the grid).
    if c_block is not None:
        c_blk = int(c_block)
    elif sub * C * HW * itemsize <= in_budget:
        c_blk = C
    else:
        c_blk = 1
        for d in range(C, 0, -1):
            if C % d == 0 and sub * d * HW * itemsize <= in_budget:
                c_blk = d
                break
    assert C % c_blk == 0
    n_c = C // c_blk

    # Batch tile: multiple of the sublane count, sized to the VMEM budget,
    # clamped so the grid keeps several 'parallel' steps (megacore + pipeline).
    if block_b is None:
        block_b = min(in_budget // max(1, c_blk * HW * itemsize),
                      sp_budget // max(1, HW * 4))
        block_b = max(sub, block_b // sub * sub)
        if B >= 4 * sub:
            block_b = min(block_b, max(sub, pl.cdiv(B, 4 * sub) * sub))
        elif B >= 2 * sub:
            block_b = min(block_b, max(sub, pl.cdiv(B, 2 * sub) * sub))
    else:
        block_b = max(sub, -(-int(block_b) // sub) * sub)
    block_b = min(block_b, pl.cdiv(B, sub) * sub)

    # cdiv grid; pad the batch axis so block_b divides it (padded rows are
    # zeros, computed independently and dropped — no divisor-search cliff).
    n_b = pl.cdiv(B, block_b)
    B_pad = n_b * block_b
    if B_pad != B:
        x2 = jnp.pad(x2, ((0, B_pad - B), (0, 0)))

    vmem_limit = min(max(vmem_cap * 3 // 4, 32 * 1024 * 1024), 100 * 1024 * 1024)

    cost = pl.CostEstimate(
        flops=int(B_pad * HW * (2 * C + 45)),
        transcendentals=int(B_pad * HW),
        bytes_accessed=int(B_pad * C * HW * itemsize + B_pad * HW * itemsize
                           + 4 * HW * 4 + 18 * 4),
    )

    kernel = functools.partial(_spatial_attention_kernel,
                               w=W, hw=HW, c_blk=c_blk, n_c=n_c)

    if n_c == 1:
        grid = (n_b,)
        in_specs = [
            pl.BlockSpec((block_b, C * HW), lambda b: (b, 0)),
            pl.BlockSpec((4, HW), lambda b: (0, 0)),
            pl.BlockSpec(memory_space=pltpu.MemorySpace.SMEM),
        ]
        out_specs = pl.BlockSpec((block_b, HW), lambda b: (b, 0))
        scratch_shapes = []
        dims = ("parallel",)
    else:
        grid = (n_b, n_c)                    # channel reduction axis last
        in_specs = [
            pl.BlockSpec((block_b, c_blk * HW), lambda b, c: (b, c)),
            pl.BlockSpec((4, HW), lambda b, c: (0, 0)),
            pl.BlockSpec(memory_space=pltpu.MemorySpace.SMEM),
        ]
        out_specs = pl.BlockSpec((block_b, HW), lambda b, c: (b, 0))
        scratch_shapes = [pltpu.VMEM((block_b, HW), jnp.float32),
                          pltpu.VMEM((block_b, HW), jnp.float32)]
        dims = ("parallel", "arbitrary")

    out2 = pl.pallas_call(
        kernel,
        out_shape=jax.ShapeDtypeStruct((B_pad, HW), x.dtype),
        grid=grid,
        in_specs=in_specs,
        out_specs=out_specs,
        scratch_shapes=scratch_shapes,
        compiler_params=pltpu.CompilerParams(
            dimension_semantics=dims,
            vmem_limit_bytes=int(vmem_limit),
        ),
        cost_estimate=cost,
    )(x2, masks, w_flat)

    if B_pad != B:
        out2 = out2[:B]
    return out2.reshape(B, 1, H, W)


def spatial_attention_ref(x, w):
    """Plain-JAX reference matching the PyTorch module."""
    avg = jnp.mean(x, axis=1, keepdims=True)
    mx = jnp.max(x, axis=1, keepdims=True)
    cat = jnp.concatenate([avg, mx], axis=1)              # (B, 2, H, W)
    out = jax.lax.conv_general_dilated(
        cat, w, window_strides=(1, 1), padding="SAME",
        dimension_numbers=("NCHW", "OIHW", "NCHW"))
    return jax.nn.sigmoid(out)


if __name__ == "__main__":
    key = jax.random.PRNGKey(0)
    kx, kw, kx2, kw2 = jax.random.split(key, 4)

    fan_in = 2 * 3 * 3
    bound = 1.0 / np.sqrt(fan_in)

    # Primary case: (B, C, H, W) = (2, 4, 16, 16).
    B, C, H, W = 2, 4, 16, 16
    x = jax.random.normal(kx, (B, C, H, W), dtype=jnp.float32)
    w = jax.random.uniform(kw, (1, 2, 3, 3), dtype=jnp.float32,
                           minval=-bound, maxval=bound)

    out = jax.block_until_ready(spatial_attention(x, w))
    ref = jax.block_until_ready(spatial_attention_ref(x, w))
    assert out.shape == (B, 1, H, W)
    assert np.allclose(np.asarray(out), np.asarray(ref), atol=1e-5, rtol=1e-5)

    # Secondary case: ragged batch (padding path) + forced channel-split grid
    # axis (the accumulator path used for very large C*HW on v7x).
    B2, C2, H2, W2 = 3, 6, 8, 16
    x_b = jax.random.normal(kx2, (B2, C2, H2, W2), dtype=jnp.float32)
    w_b = jax.random.uniform(kw2, (1, 2, 3, 3), dtype=jnp.float32,
                             minval=-bound, maxval=bound)
    out_b = jax.block_until_ready(spatial_attention(x_b, w_b, c_block=2))
    ref_b = jax.block_until_ready(spatial_attention_ref(x_b, w_b))
    assert np.allclose(np.asarray(out_b), np.asarray(ref_b), atol=1e-5, rtol=1e-5)

    print("KERNEL_OK")
</pallas_src>

<mosaic_0001>
module attributes {stable_mosaic.version = 11 : i64} {
  func.func @_spatial_attention_kernel(%arg0: i32, %arg1: memref<8x1024xf32, #tpu.memory_space<vmem>>, %arg2: memref<4x256xf32, #tpu.memory_space<vmem>>, %arg3: memref<18xf32, #tpu.memory_space<smem>>, %arg4: memref<8x256xf32, #tpu.memory_space<vmem>>) attributes {dimension_semantics = [#tpu.dimension_semantics<parallel>], iteration_bounds = array<i64: 1>, scalar_prefetch = 0 : i64, scratch_operands = 0 : i64, tpu.core_type = #tpu.core_type<tc>, window_params = [{transform_indices = @transform_0, window_bounds = array<i64: 8, 1024>}, {pipeline_mode = #tpu.pipeline_mode<synchronous>, transform_indices = @transform_1, window_bounds = array<i64: 4, 256>}, {transform_indices = @transform_2, window_bounds = array<i64: 18>}, {transform_indices = @transform_3, window_bounds = array<i64: 8, 256>}]} {
    %c0 = arith.constant 0 : index
    %c0_0 = arith.constant 0 : index
    %0 = vector.load %arg1[%c0, %c0_0] : memref<8x1024xf32, #tpu.memory_space<vmem>>, vector<8x256xf32>
    %c0_1 = arith.constant 0 : index
    %c256 = arith.constant 256 : index
    %1 = vector.load %arg1[%c0_1, %c256] : memref<8x1024xf32, #tpu.memory_space<vmem>>, vector<8x256xf32>
    %2 = arith.addf %0, %1 : vector<8x256xf32>
    %3 = arith.maximumf %0, %1 : vector<8x256xf32>
    %c0_2 = arith.constant 0 : index
    %c512 = arith.constant 512 : index
    %4 = vector.load %arg1[%c0_2, %c512] : memref<8x1024xf32, #tpu.memory_space<vmem>>, vector<8x256xf32>
    %5 = arith.addf %2, %4 : vector<8x256xf32>
    %6 = arith.maximumf %3, %4 : vector<8x256xf32>
    %c0_3 = arith.constant 0 : index
    %c768 = arith.constant 768 : index
    %7 = vector.load %arg1[%c0_3, %c768] : memref<8x1024xf32, #tpu.memory_space<vmem>>, vector<8x256xf32>
    %8 = arith.addf %5, %7 : vector<8x256xf32>
    %9 = arith.maximumf %6, %7 : vector<8x256xf32>
    %c0_4 = arith.constant 0 : index
    %c0_5 = arith.constant 0 : index
    %10 = vector.load %arg2[%c0_4, %c0_5] : memref<4x256xf32, #tpu.memory_space<vmem>>, vector<1x256xf32>
    %c1 = arith.constant 1 : index
    %c0_6 = arith.constant 0 : index
    %11 = vector.load %arg2[%c1, %c0_6] : memref<4x256xf32, #tpu.memory_space<vmem>>, vector<1x256xf32>
    %c2 = arith.constant 2 : index
    %c0_7 = arith.constant 0 : index
    %12 = vector.load %arg2[%c2, %c0_7] : memref<4x256xf32, #tpu.memory_space<vmem>>, vector<1x256xf32>
    %c3 = arith.constant 3 : index
    %c0_8 = arith.constant 0 : index
    %13 = vector.load %arg2[%c3, %c0_8] : memref<4x256xf32, #tpu.memory_space<vmem>>, vector<1x256xf32>
    %c1_i32 = arith.constant 1 : i32
    %14 = tpu.dynamic_rotate %8 by %c1_i32 dim 1 : vector<8x256xf32>, i32 -> vector<8x256xf32>
    %15 = vector.broadcast %10 : vector<1x256xf32> to vector<8x256xf32>
    %16 = arith.mulf %14, %15 : vector<8x256xf32>
    %c255_i32 = arith.constant 255 : i32
    %17 = tpu.dynamic_rotate %8 by %c255_i32 dim 1 : vector<8x256xf32>, i32 -> vector<8x256xf32>
    %18 = vector.broadcast %11 : vector<1x256xf32> to vector<8x256xf32>
    %19 = arith.mulf %17, %18 : vector<8x256xf32>
    %c1_i32_9 = arith.constant 1 : i32
    %20 = tpu.dynamic_rotate %9 by %c1_i32_9 dim 1 : vector<8x256xf32>, i32 -> vector<8x256xf32>
    %21 = vector.broadcast %10 : vector<1x256xf32> to vector<8x256xf32>
    %22 = arith.mulf %20, %21 : vector<8x256xf32>
    %c255_i32_10 = arith.constant 255 : i32
    %23 = tpu.dynamic_rotate %9 by %c255_i32_10 dim 1 : vector<8x256xf32>, i32 -> vector<8x256xf32>
    %24 = vector.broadcast %11 : vector<1x256xf32> to vector<8x256xf32>
    %25 = arith.mulf %23, %24 : vector<8x256xf32>
    %c0_11 = arith.constant 0 : index
    %26 = memref.load %arg3[%c0_11] : memref<18xf32, #tpu.memory_space<smem>>
    %c1_12 = arith.constant 1 : index
    %27 = memref.load %arg3[%c1_12] : memref<18xf32, #tpu.memory_space<smem>>
    %c2_13 = arith.constant 2 : index
    %28 = memref.load %arg3[%c2_13] : memref<18xf32, #tpu.memory_space<smem>>
    %c3_14 = arith.constant 3 : index
    %29 = memref.load %arg3[%c3_14] : memref<18xf32, #tpu.memory_space<smem>>
    %c4 = arith.constant 4 : index
    %30 = memref.load %arg3[%c4] : memref<18xf32, #tpu.memory_space<smem>>
    %c5 = arith.constant 5 : index
    %31 = memref.load %arg3[%c5] : memref<18xf32, #tpu.memory_space<smem>>
    %c6 = arith.constant 6 : index
    %32 = memref.load %arg3[%c6] : memref<18xf32, #tpu.memory_space<smem>>
    %c7 = arith.constant 7 : index
    %33 = memref.load %arg3[%c7] : memref<18xf32, #tpu.memory_space<smem>>
    %c8 = arith.constant 8 : index
    %34 = memref.load %arg3[%c8] : memref<18xf32, #tpu.memory_space<smem>>
    %c9 = arith.constant 9 : index
    %35 = memref.load %arg3[%c9] : memref<18xf32, #tpu.memory_space<smem>>
    %c10 = arith.constant 10 : index
    %36 = memref.load %arg3[%c10] : memref<18xf32, #tpu.memory_space<smem>>
    %c11 = arith.constant 11 : index
    %37 = memref.load %arg3[%c11] : memref<18xf32, #tpu.memory_space<smem>>
    %c12 = arith.constant 12 : index
    %38 = memref.load %arg3[%c12] : memref<18xf32, #tpu.memory_space<smem>>
    %c13 = arith.constant 13 : index
    %39 = memref.load %arg3[%c13] : memref<18xf32, #tpu.memory_space<smem>>
    %c14 = arith.constant 14 : index
    %40 = memref.load %arg3[%c14] : memref<18xf32, #tpu.memory_space<smem>>
    %c15 = arith.constant 15 : index
    %41 = memref.load %arg3[%c15] : memref<18xf32, #tpu.memory_space<smem>>
    %c16 = arith.constant 16 : index
    %42 = memref.load %arg3[%c16] : memref<18xf32, #tpu.memory_space<smem>>
    %c17 = arith.constant 17 : index
    %43 = memref.load %arg3[%c17] : memref<18xf32, #tpu.memory_space<smem>>
    %44 = vector.broadcast %26 : f32 to vector<8x256xf32>
    %45 = arith.mulf %44, %16 : vector<8x256xf32>
    %46 = vector.broadcast %27 : f32 to vector<8x256xf32>
    %47 = arith.mulf %46, %8 : vector<8x256xf32>
    %48 = arith.addf %45, %47 : vector<8x256xf32>
    %49 = vector.broadcast %28 : f32 to vector<8x256xf32>
    %50 = arith.mulf %49, %19 : vector<8x256xf32>
    %51 = arith.addf %48, %50 : vector<8x256xf32>
    %52 = vector.broadcast %35 : f32 to vector<8x256xf32>
    %53 = arith.mulf %52, %22 : vector<8x256xf32>
    %54 = arith.addf %51, %53 : vector<8x256xf32>
    %55 = vector.broadcast %36 : f32 to vector<8x256xf32>
    %56 = arith.mulf %55, %9 : vector<8x256xf32>
    %57 = arith.addf %54, %56 : vector<8x256xf32>
    %58 = vector.broadcast %37 : f32 to vector<8x256xf32>
    %59 = arith.mulf %58, %25 : vector<8x256xf32>
    %60 = arith.addf %57, %59 : vector<8x256xf32>
    %61 = vector.broadcast %29 : f32 to vector<8x256xf32>
    %62 = arith.mulf %61, %16 : vector<8x256xf32>
    %63 = vector.broadcast %30 : f32 to vector<8x256xf32>
    %64 = arith.mulf %63, %8 : vector<8x256xf32>
    %65 = arith.addf %62, %64 : vector<8x256xf32>
    %66 = vector.broadcast %31 : f32 to vector<8x256xf32>
    %67 = arith.mulf %66, %19 : vector<8x256xf32>
    %68 = arith.addf %65, %67 : vector<8x256xf32>
    %69 = vector.broadcast %38 : f32 to vector<8x256xf32>
    %70 = arith.mulf %69, %22 : vector<8x256xf32>
    %71 = arith.addf %68, %70 : vector<8x256xf32>
    %72 = vector.broadcast %39 : f32 to vector<8x256xf32>
    %73 = arith.mulf %72, %9 : vector<8x256xf32>
    %74 = arith.addf %71, %73 : vector<8x256xf32>
    %75 = vector.broadcast %40 : f32 to vector<8x256xf32>
    %76 = arith.mulf %75, %25 : vector<8x256xf32>
    %77 = arith.addf %74, %76 : vector<8x256xf32>
    %78 = vector.broadcast %32 : f32 to vector<8x256xf32>
    %79 = arith.mulf %78, %16 : vector<8x256xf32>
    %80 = vector.broadcast %33 : f32 to vector<8x256xf32>
    %81 = arith.mulf %80, %8 : vector<8x256xf32>
    %82 = arith.addf %79, %81 : vector<8x256xf32>
    %83 = vector.broadcast %34 : f32 to vector<8x256xf32>
    %84 = arith.mulf %83, %19 : vector<8x256xf32>
    %85 = arith.addf %82, %84 : vector<8x256xf32>
    %86 = vector.broadcast %41 : f32 to vector<8x256xf32>
    %87 = arith.mulf %86, %22 : vector<8x256xf32>
    %88 = arith.addf %85, %87 : vector<8x256xf32>
    %89 = vector.broadcast %42 : f32 to vector<8x256xf32>
    %90 = arith.mulf %89, %9 : vector<8x256xf32>
    %91 = arith.addf %88, %90 : vector<8x256xf32>
    %92 = vector.broadcast %43 : f32 to vector<8x256xf32>
    %93 = arith.mulf %92, %25 : vector<8x256xf32>
    %94 = arith.addf %91, %93 : vector<8x256xf32>
    %c16_i32 = arith.constant 16 : i32
    %95 = tpu.dynamic_rotate %60 by %c16_i32 dim 1 : vector<8x256xf32>, i32 -> vector<8x256xf32>
    %96 = vector.broadcast %12 : vector<1x256xf32> to vector<8x256xf32>
    %97 = arith.mulf %95, %96 : vector<8x256xf32>
    %98 = arith.addf %77, %97 : vector<8x256xf32>
    %c240_i32 = arith.constant 240 : i32
    %99 = tpu.dynamic_rotate %94 by %c240_i32 dim 1 : vector<8x256xf32>, i32 -> vector<8x256xf32>
    %100 = vector.broadcast %13 : vector<1x256xf32> to vector<8x256xf32>
    %101 = arith.mulf %99, %100 : vector<8x256xf32>
    %102 = arith.addf %98, %101 : vector<8x256xf32>
    %103 = arith.negf %102 : vector<8x256xf32>
    %104 = math.exp %103 : vector<8x256xf32>
    %cst = arith.constant 1.000000e+00 : f32
    %105 = vector.broadcast %cst : f32 to vector<8x256xf32>
    %106 = arith.addf %105, %104 : vector<8x256xf32>
    %107 = arith.divf %105, %106 : vector<8x256xf32>
    %c0_15 = arith.constant 0 : index
    %c0_16 = arith.constant 0 : index
    %108 = vector.load %arg4[%c0_15, %c0_16] : memref<8x256xf32, #tpu.memory_space<vmem>>, vector<8x256xf32>
    tpu.vector_store %arg4[%c0_15, %c0_16], %107 {strides = array<i32>} : memref<8x256xf32, #tpu.memory_space<vmem>>, vector<8x256xf32>,
    return
  }
  func.func @transform_0(%arg0: i32) -> (i32, i32) {
    %c0_i32 = arith.constant 0 : i32
    %c0_i32_0 = arith.constant 0 : i32
    return %arg0, %c0_i32 : i32, i32
  }
  func.func @transform_1(%arg0: i32) -> (i32, i32) {
    %c0_i32 = arith.constant 0 : i32
    %c0_i32_0 = arith.constant 0 : i32
    %c0_i32_1 = arith.constant 0 : i32
    return %c0_i32, %c0_i32_0 : i32, i32
  }
  func.func @transform_2(%arg0: i32) -> i32 {
    %c0_i32 = arith.constant 0 : i32
    %c0_i32_0 = arith.constant 0 : i32
    return %c0_i32 : i32
  }
  func.func @transform_3(%arg0: i32) -> (i32, i32) {
    %c0_i32 = arith.constant 0 : i32
    %c0_i32_0 = arith.constant 0 : i32
    return %arg0, %c0_i32 : i32, i32
  }
}

</mosaic_0001>

<bundles_post_ra>
// kernel: tpu_custom_call.1
= control target key start
LH: loop header
LB: loop body
LE: loop exit
PB: predicated region body
PF: predicated region fallthrough
CT: control target
= control target key end

     0   :  { %8 = vsyncpa [#allocation3], 0  ;;  %s639_s0 = inlined_call_operand.hbm [shape: f32[8,1024], index: 0, kind: input, shape index: {}]   ;;  %s640_s1 = inlined_call_operand.hbm [shape: f32[4,256], index: 1, kind: input, shape index: {}]   ;;  %s641_s2 = inlined_call_operand.vmem [shape: f32[18], index: 2, kind: input, shape index: {}]   ;;  %s642_s3 = inlined_call_operand.hbm [shape: f32[8,256], index: 3, kind: output, shape index: {}]  }
   0x1   :  { %9 = vsyncpa [#allocation7], 0 }
   0x2   :  { %10 = vsyncpa [#allocation5], 0 }
   0x3   :  { %11 = vsyncpa [#allocation4], 0  ;;  %s435_s12 = smov [#allocation2]   ;;  %s436_s14 = smov [#allocation6]  }
   0x4   :  { %s18_s13 = sshll.u32 %s435_s12, 4  ;;  %s28_s15 = sshll.u32 %s436_s14, 4  ;;  %s19_s13 = int_to_ptr.vmem [resolvable:$true] %s18_s13  ;;  %s29_s15 = int_to_ptr.vmem [resolvable:$true] %s28_s15 }
   0x5   :  { %s349_s18 = scalar_lea.hbm %s639_s0, 1024 }
   0x6   :  { %p350_p0 = scmp.ne.s32.totalorder %s639_s0, %s349_s18  ;;  %p353_p1 = scmp.lt.u32.totalorder %s349_s18, %s639_s0 }
   0x8   :  { %p355_p2 = pnand %p353_p1, %p350_p0 }
   0xa   :  { %358 = shalt.err (!%p355_p2)
}
   0xb   :  { %s359_s23 = scalar_lea.vmem %s19_s13, 1024  ;;  %p364_p4 = scmp.lt.s32.totalorder %s19_s13, %s19_s13 }
   0xc   :  { %p360_p3 = scmp.ne.s32.totalorder %s19_s13, %s359_s23  ;;  %p365_p5 = scmp.lt.s32.totalorder %s359_s23, %s359_s23 }
   0xe   :  { %p366_p6 = por %p365_p5, %p364_p4 }
  0x10   :  { %p367_p7 = pnand %p366_p6, %p360_p3 }
  0x12   :  { %370 = shalt.err (!%p367_p7)
}
  0x13   :  { %21 = dma.hbm_to_vmem [thread:$0]  %s639_s0, 1024, %s19_s13, [#allocation3]  }
  0x14   :  { %s371_s28 = scalar_lea.hbm %s640_s1, 128 }
  0x15   :  { %p372_p8 = scmp.ne.s32.totalorder %s640_s1, %s371_s28  ;;  %p375_p9 = scmp.lt.u32.totalorder %s371_s28, %s640_s1 }
  0x17   :  { %p377_p10 = pnand %p375_p9, %p372_p8 }
  0x19   :  { %380 = shalt.err (!%p377_p10)
}
  0x1a   :  { %s381_s6 = scalar_lea.vmem %s29_s15, 128  ;;  %p386_p12 = scmp.lt.s32.totalorder %s29_s15, %s29_s15 }
  0x1b   :  { %p382_p11 = scmp.ne.s32.totalorder %s29_s15, %s381_s6  ;;  %p387_p13 = scmp.lt.s32.totalorder %s381_s6, %s381_s6 }
  0x1d   :  { %p388_p0 = por %p387_p13, %p386_p12 }
  0x1f   :  { %p389_p1 = pnand %p388_p0, %p382_p11 }
  0x21   :  { %392 = shalt.err (!%p389_p1)
}
  0x22   :  { %31 = dma.hbm_to_vmem [thread:$0]  %s640_s1, 128, %s29_s15, [#allocation7]  }
  0x23   :  { %s38_s10 = sshll.u32 %s641_s2, 4  ;;  %s39_s10 = int_to_ptr.vmem [resolvable:$true] %s38_s10 }
  0x24   :  { %s393_s11 = scalar_lea.vmem %s39_s10, 16  ;;  %p398_p3 = scmp.lt.s32.totalorder %s39_s10, %s39_s10 }
  0x25   :  { %p394_p2 = scmp.ne.s32.totalorder %s39_s10, %s393_s11  ;;  %p399_p4 = scmp.lt.s32.totalorder %s393_s11, %s393_s11 }
  0x27   :  { %p400_p5 = por %p399_p4, %p398_p3 }
  0x29   :  { %p401_p6 = pnand %p400_p5, %p394_p2 }
  0x2b   :  { %404 = shalt.err (!%p401_p6)
}
  0x2c   :  { %s437_s12 = smov [#allocation8]  }
  0x2d   :  { %41 = dma.vmem_to_smem %s39_s10, 16, %s437_s12, [#allocation5]  }
  0x2e   :  { %427 = dma.done.wait [#allocation3], 1024  }
  0x2f   :  { %428 = vsyncadd [#allocation3], 4294966272 }
  0x30   :  { %429 = dma.done.wait [#allocation7], 128  }
  0x31   :  { %430 = vsyncadd [#allocation7], 4294967168 }
  0x32   :  { %431 = dma.done.wait [#allocation5], 16  }
  0x33   :  { %432 = vsyncadd [#allocation5], 4294967280 }
  0x34   :  { %51 = sfence }
  0x35   :  { %v52_v0 = vld [vmem:[#allocation2] sm:$0xff]  ;;  %v54_v1 = vld [vmem:[#allocation2 + $0x10] sm:$0xff]  ;;  %v53_v4 = vld [vmem:[#allocation2 + $0x8] sm:$0xff]  ;;  %s438_s1 = smov 127   ;;  %s439_s2 = smov 1   ;;  %v83_v20 = vlaneseq }
  0x36   :  { %v60_v2 = vld [vmem:[#allocation2 + $0x20] sm:$0xff]  ;;  %v56_v3 = vadd.f32 %v54_v1, %v52_v0  ;;  %v55_v5 = vld [vmem:[#allocation2 + $0x18] sm:$0xff]  ;;  %v66_v6 = vld [vmem:[#allocation2 + $0x30] sm:$0xff]  ;;  %v58_v11 = vmax.f32 %v52_v0, %v54_v1  ;;  %s502_s13 = sld [smem:[#allocation8 + $0x2]]  ;;  %s504_s14 = sld [smem:[#allocation8 + $0x5]] }
  0x37   :  { %v57_v7 = vadd.f32 %v55_v5, %v53_v4  ;;  %v61_v8 = vld [vmem:[#allocation2 + $0x28] sm:$0xff]  ;;  %v59_v10 = vmax.f32 %v53_v4, %v55_v5  ;;  %v67_v13 = vld [vmem:[#allocation2 + $0x38] sm:$0xff]  ;;  %s506_s15 = sld [smem:[#allocation8 + $0x8]]  ;;  %v90_v21 = vshrl.u32 %v83_v20, 7  ;;  %s508_s16 = sld [smem:[#allocation8 + $0x1]]  ;;  %v520_v23 = vand.u32 127, %v83_v20 }
  0x38   :  { %v62_v9 = vadd.f32 %v60_v2, %v56_v3  ;;  %v64_v17 = vmax.f32 %v58_v11, %v60_v2  ;;  %s510_s17 = sld [smem:[#allocation8 + $0x4]]  ;;  %s512_s18 = sld [smem:[#allocation8]]  ;;  %v74_v22 = vld [vmem:[#allocation6 + $0x1] ss:$4 sm:$0x3] }
  0x39   :  { %v63_v12 = vadd.f32 %v61_v8, %v57_v7  ;;  %v65_v16 = vmax.f32 %v59_v10, %v61_v8  ;;  %s514_s19 = sld [smem:[#allocation8 + $0x7]]  ;;  %s516_s20 = sld [smem:[#allocation8 + $0x3]]  ;;  %v526_v24 = vsub.s32 0, %v90_v21  ;;  %v72_v25 = vld [vmem:[#allocation6] ss:$4 sm:$0x3] }
  0x3a   :  { %v490_v14 = vadd.f32 %v66_v6, %v62_v9  ;;  %v496_v19 = vmax.f32 %v64_v17, %v66_v6  ;;  %s518_s21 = sld [smem:[#allocation8 + $0x6]]  ;;  %s522_s22 = sld [smem:[#allocation8 + $0x9]]  ;;  %v532_v26 = vsub.s32 1, %v90_v21  ;;  %vm105_vm0 = vcmp.lt.s32.totalorder %v520_v23, 127 }
  0x3b   :  { %v69_v15 = vadd.f32 %v67_v13, %v63_v12  ;;  %v494_v18 = vmax.f32 %v65_v16, %v67_v13  ;;  %s524_s23 = sld [smem:[#allocation8 + $0xc]]  ;;  %s528_s24 = sld [smem:[#allocation8 + $0xf]]  ;;  %v544_v27 = vrot.slane %v74_v22, %v526_v24  ;;  %vm85_vm1 = vcmp.lt.s32.totalorder %v520_v23, 1 }
  0x3c   :  { %101 = vrot.lane.b32.xlu1 %v490_v14, %s438_s1  ;;  %79 = vrot.lane.b32.xlu0 %v490_v14, %s439_s2  ;;  %s530_s25 = sld [smem:[#allocation8 + $0xe]]  ;;  %s534_s26 = sld [smem:[#allocation8 + $0xa]]  ;;  %v550_v30 = vrot.slane %v74_v22, %v532_v26  ;;  %v163_v31 = vstv %s502_s13  ;;  %v554_v32 = vrot.slane %v72_v25, %v526_v24  ;;  %v191_v36 = vstv %s504_s14 }
  0x3d   :  { %s536_s27 = sld [smem:[#allocation8 + $0xb]]  ;;  %s538_s28 = sld [smem:[#allocation8 + $0x10]]  ;;  %v158_v28 = vstv %s508_s16  ;;  %v219_v37 = vstv %s506_s15  ;;  %v96_v38 = vrot.slane %v72_v25, %v532_v26  ;;  %vm243_vm2 = vcmp.lt.s32.totalorder %v520_v23, 16 }
  0x3e   :  { %s540_s29 = sld [smem:[#allocation8 + $0xd]]  ;;  %v186_v29 = vstv %s510_s17  ;;  %s557_s30 = sld [smem:[#allocation8 + $0x11]]  ;;  %v155_v39 = vstv %s512_s18  ;;  %v160_v40 = vmul.f32 %v158_v28, %v69_v15  ;;  %v159_v43 = vmul.f32 %v158_v28, %v490_v14 }
  0x3f   :  { %v214_v33 = vstv %s514_s19  ;;  %v183_v41 = vstv %s516_s20  ;;  %v188_v42 = vmul.f32 %v186_v29, %v69_v15  ;;  %v187_v46 = vmul.f32 %v186_v29, %v490_v14  ;;  %s440_s4 = smov 16   ;;  %s441_s5 = smov 112  }
  0x40   :  { %103 = vrot.lane.b32.xlu1 %v69_v15, %s438_s1  ;;  %81 = vrot.lane.b32.xlu0 %v69_v15, %s439_s2  ;;  %v211_v44 = vstv %s518_s21  ;;  %v216_v45 = vmul.f32 %v214_v33, %v69_v15  ;;  %v215_v47 = vmul.f32 %v214_v33, %v490_v14  ;;  %v168_v48 = vstv %s522_s22  ;;  %s442_s6 = smov [#allocation9]  }
  0x41   :  { %v196_v49 = vstv %s524_s23  ;;  %v224_v50 = vstv %s528_s24  ;;  %vm265_vm3 = vcmp.lt.s32.totalorder %v520_v23, 112  ;;  %s303_s0 = sshll.u32 %s442_s6, 4  ;;  %s304_s0 = int_to_ptr.vmem [resolvable:$true] %s303_s0 }
  0x42   :  { %v206_v51 = vstv %s530_s25  ;;  %v173_v54 = vstv %s534_s26  ;;  %s405_s7 = scalar_lea.vmem %s304_s0, 256  ;;  %p410_p8 = scmp.lt.s32.totalorder %s304_s0, %s304_s0 }
  0x43   :  { %v178_v55 = vstv %s536_s27  ;;  %v229_v56 = vstv %s538_s28  ;;  %v175_v2 = vmul.f32 %v173_v54, %v494_v18  ;;  %v174_v3 = vmul.f32 %v173_v54, %v496_v19  ;;  %p406_p7 = scmp.ne.s32.totalorder %s304_s0, %s405_s7  ;;  %p411_p9 = scmp.lt.s32.totalorder %s405_s7, %s405_s7 }
  0x44   :  { %123 = vrot.lane.b32.xlu1 %v494_v18, %s439_s2  ;;  %121 = vrot.lane.b32.xlu0 %v496_v19, %s439_s2  ;;  %v201_v57 = vstv %s540_s29  ;;  %v231_v4 = vmul.f32 %v229_v56, %v494_v18  ;;  %v234_v5 = vstv %s557_s30 }
  0x45   :  { %v202_v10 = vmul.f32 %v201_v57, %v496_v19  ;;  %v203_v11 = vmul.f32 %v201_v57, %v494_v18  ;;  %p412_p10 = por %p411_p9, %p410_p8 }
  0x47   :  { %p413_p11 = pnand %p412_p10, %p406_p7 }
  0x48   :  { %131 = vrot.lane.b32.xlu1 %v494_v18, %s438_s1  ;;  %129 = vrot.lane.b32.xlu0 %v496_v19, %s438_s1 }
  0xae   :  { %v102_v34 = vpop.permute.xlu1 %101  ;;  %v80_v35 = vpop.permute.xlu0 %79 }
  0xb2   :  { %v104_v52 = vpop.permute.xlu1 %103  ;;  %v82_v53 = vpop.permute.xlu0 %81 }
  0xb3   :  { %v106_v58 = vsel %vm105_vm0, %v102_v34, %v104_v52  ;;  %v107_v59 = vsel %vm105_vm0, %v104_v52, %v102_v34  ;;  %v86_v60 = vsel %vm85_vm1, %v80_v35, %v82_v53  ;;  %v87_v61 = vsel %vm85_vm1, %v82_v53, %v80_v35 }
  0xb4   :  { %v119_v62 = vmul.f32 %v544_v27, %v106_v58  ;;  %v120_v63 = vmul.f32 %v550_v30, %v107_v59  ;;  %v99_v0 = vmul.f32 %v554_v32, %v87_v61  ;;  %v100_v1 = vmul.f32 %v96_v38, %v86_v60 }
  0xb6   :  { %v164_v6 = vmul.f32 %v163_v31, %v119_v62  ;;  %v165_v7 = vmul.f32 %v163_v31, %v120_v63  ;;  %v124_v8 = vpop.permute.xlu1 %123  ;;  %v122_v9 = vpop.permute.xlu0 %121  ;;  %v192_v12 = vmul.f32 %v191_v36, %v119_v62  ;;  %v193_v13 = vmul.f32 %v191_v36, %v120_v63 }
  0xb7   :  { %v156_v14 = vmul.f32 %v155_v39, %v99_v0  ;;  %v157_v15 = vmul.f32 %v155_v39, %v100_v1  ;;  %v220_v16 = vmul.f32 %v219_v37, %v119_v62  ;;  %v184_v17 = vmul.f32 %v183_v41, %v99_v0 }
  0xb8   :  { %v185_v20 = vmul.f32 %v183_v41, %v100_v1  ;;  %v213_v21 = vmul.f32 %v211_v44, %v100_v1  ;;  %v212_v25 = vmul.f32 %v211_v44, %v99_v0  ;;  %v125_v28 = vsel %vm85_vm1, %v122_v9, %v124_v8 }
  0xb9   :  { %v161_v22 = vadd.f32 %v159_v43, %v156_v14  ;;  %v126_v29 = vsel %vm85_vm1, %v124_v8, %v122_v9  ;;  %v162_v31 = vadd.f32 %v160_v40, %v157_v15  ;;  %v189_v33 = vadd.f32 %v187_v46, %v184_v17 }
  0xba   :  { %v190_v18 = vadd.f32 %v188_v42, %v185_v20  ;;  %v218_v34 = vadd.f32 %v216_v45, %v213_v21  ;;  %v132_v35 = vpop.permute.xlu1 %131  ;;  %v130_v36 = vpop.permute.xlu0 %129  ;;  %v127_v39 = vmul.f32 %v126_v29, %v554_v32  ;;  %v128_v52 = vmul.f32 %v125_v28, %v96_v38  ;;  %v78_v21 = vld [vmem:[#allocation6 + $0x3] ss:$4 sm:$0x3] }
  0xbb   :  { %v133_v41 = vsel %vm105_vm0, %v130_v36, %v132_v35  ;;  %v134_v43 = vsel %vm105_vm0, %v132_v35, %v130_v36  ;;  %v194_v53 = vadd.f32 %v192_v12, %v189_v33  ;;  %v217_v45 = vadd.f32 %v215_v47, %v212_v25 }
  0xbc   :  { %v195_v44 = vadd.f32 %v193_v13, %v190_v18  ;;  %v135_v40 = vmul.f32 %v133_v41, %v544_v27  ;;  %v136_v42 = vmul.f32 %v134_v43, %v550_v30  ;;  %v170_v46 = vmul.f32 %v168_v48, %v128_v52 }
  0xbd   :  { %v197_v54 = vmul.f32 %v196_v49, %v127_v39  ;;  %v198_v32 = vmul.f32 %v196_v49, %v128_v52  ;;  %v221_v38 = vmul.f32 %v219_v37, %v120_v63  ;;  %v169_v57 = vmul.f32 %v168_v48, %v127_v39 }
  0xbe   :  { %v225_v58 = vmul.f32 %v224_v50, %v127_v39  ;;  %v226_v59 = vmul.f32 %v224_v50, %v128_v52  ;;  %v207_v62 = vmul.f32 %v206_v51, %v135_v40  ;;  %v167_v0 = vadd.f32 %v165_v7, %v162_v31 }
  0xbf   :  { %v199_v60 = vadd.f32 %v197_v54, %v194_v53  ;;  %v200_v61 = vadd.f32 %v198_v32, %v195_v44  ;;  %v208_v27 = vmul.f32 %v206_v51, %v136_v42  ;;  %v166_v1 = vadd.f32 %v164_v6, %v161_v22 }
  0xc0   :  { %v223_v30 = vadd.f32 %v221_v38, %v218_v34  ;;  %v230_v47 = vmul.f32 %v229_v56, %v496_v19  ;;  %v172_v8 = vadd.f32 %v170_v46, %v167_v0  ;;  %v180_v49 = vmul.f32 %v178_v55, %v136_v42 }
  0xc1   :  { %v222_v37 = vadd.f32 %v220_v16, %v217_v45  ;;  %v204_v48 = vadd.f32 %v202_v10, %v199_v60  ;;  %v171_v63 = vadd.f32 %v169_v57, %v166_v1  ;;  %v179_v50 = vmul.f32 %v178_v55, %v135_v40 }
  0xc2   :  { %v228_v9 = vadd.f32 %v226_v59, %v223_v30  ;;  %v205_v12 = vadd.f32 %v203_v11, %v200_v61  ;;  %v177_v13 = vadd.f32 %v175_v2, %v172_v8  ;;  %v236_v19 = vmul.f32 %v234_v5, %v136_v42  ;;  %v76_v2 = vld [vmem:[#allocation6 + $0x2] ss:$4 sm:$0x3] }
  0xc3   :  { %v227_v7 = vadd.f32 %v225_v58, %v222_v37  ;;  %v209_v14 = vadd.f32 %v207_v62, %v204_v48  ;;  %v176_v51 = vadd.f32 %v174_v3, %v171_v63  ;;  %v235_v16 = vmul.f32 %v234_v5, %v135_v40 }
  0xc4   :  { %v233_v6 = vadd.f32 %v231_v4, %v228_v9  ;;  %v210_v15 = vadd.f32 %v208_v27, %v205_v12  ;;  %v182_v17 = vadd.f32 %v180_v49, %v177_v13  ;;  %v250_v3 = vrot.slane %v76_v2, %v526_v24 }
  0xc5   :  { %v232_v56 = vadd.f32 %v230_v47, %v227_v7  ;;  %v181_v20 = vadd.f32 %v179_v50, %v176_v51  ;;  %v254_v4 = vrot.slane %v76_v2, %v532_v26  ;;  %v272_v31 = vrot.slane %v78_v21, %v526_v24 }
  0xc6   :  { %241 = vrot.lane.b32.xlu1 %v182_v17, %s440_s4  ;;  %v238_v10 = vadd.f32 %v236_v19, %v233_v6  ;;  %v276_v33 = vrot.slane %v78_v21, %v532_v26 }
  0xc7   :  { %239 = vrot.lane.b32.xlu0 %v181_v20, %s440_s4  ;;  %v237_v55 = vadd.f32 %v235_v16, %v232_v56 }
  0xca   :  { %263 = vrot.lane.b32.xlu1 %v238_v10, %s441_s5 }
  0xcb   :  { %261 = vrot.lane.b32.xlu0 %v237_v55, %s441_s5 }
 0x138   :  { %v242_v11 = vpop.permute.xlu1 %241 }
 0x139   :  { %v240_v22 = vpop.permute.xlu0 %239 }
 0x13a   :  { %v244_v25 = vsel %vm243_vm2, %v240_v22, %v242_v11  ;;  %v245_v5 = vsel %vm243_vm2, %v242_v11, %v240_v22 }
 0x13b   :  { %v257_v28 = vmul.f32 %v250_v3, %v245_v5  ;;  %v258_v29 = vmul.f32 %v254_v4, %v244_v25 }
 0x13c   :  { %v264_v18 = vpop.permute.xlu1 %263 }
 0x13d   :  { %v262_v34 = vpop.permute.xlu0 %261  ;;  %v259_v39 = vadd.f32 %v257_v28, %v209_v14  ;;  %v260_v52 = vadd.f32 %v258_v29, %v210_v15 }
 0x13e   :  { %v266_v35 = vsel %vm265_vm3, %v262_v34, %v264_v18  ;;  %v267_v36 = vsel %vm265_vm3, %v264_v18, %v262_v34 }
 0x13f   :  { %v279_v41 = vmul.f32 %v272_v31, %v266_v35  ;;  %v280_v43 = vmul.f32 %v276_v33, %v267_v36 }
 0x141   :  { %v281_v44 = vadd.f32 %v279_v41, %v259_v39  ;;  %v282_v53 = vadd.f32 %v280_v43, %v260_v52 }
 0x143   :  { %v331_v40 = vmul.f32 -1.442695, %v281_v44  ;;  %v332_v42 = vmul.f32 -1.442695, %v282_v53 }
 0x145   :  { %341 = vpow2.f32 %v331_v40 }
 0x146   :  { %343 = vpow2.f32 %v332_v42 }
 0x14f   :  { %v342_v23 = vpop.eup %341 }
 0x150   :  { %v344_v45 = vpop.eup %343  ;;  %v289_v46 = vadd.f32 1.0, %v342_v23 }
 0x151   :  { %v290_v24 = vadd.f32 1.0, %v344_v45 }
 0x152   :  { %345 = vrcp.f32 %v289_v46 }
 0x153   :  { %347 = vrcp.f32 %v290_v24 }
 0x15c   :  { %v346_v26 = vpop.eup %345 }
 0x15d   :  { %v348_v54 = vpop.eup %347  ;;  %295 = vst [vmem:[#allocation9] sm:$0xff] %v346_v26 }
 0x15e   :  { %296 = vst [vmem:[#allocation9 + $0x8] sm:$0xff] %v348_v54 }
 0x15f   :  { %416 = shalt.err (!%p413_p11)
}
 0x160   :  { %s417_s10 = scalar_lea.hbm %s642_s3, 256 }
 0x161   :  { %p418_p12 = scmp.ne.s32.totalorder %s642_s3, %s417_s10  ;;  %p421_p13 = scmp.lt.u32.totalorder %s417_s10, %s642_s3 }
 0x163   :  { %p423_p0 = pnand %p421_p13, %p418_p12 }
 0x165   :  { %426 = shalt.err (!%p423_p0)
}
 0x166   :  { %306 = dma.vmem_to_hbm [thread:$0]  %s304_s0, 256, %s642_s3, [#allocation4]  }
 0x167   :  { %433 = dma.done.wait [#allocation4], 256  }
 0x168   :  { %434 = vsyncadd [#allocation4], 4294967040 }
 0x169   :  { %310 = vsyncpa [#allocation3], 1 }
 0x16a   :  { %311 = vsyncpa [#allocation7], 1 }
 0x16b   :  { %312 = vsyncpa [#allocation4], 1 }
 0x16c   :  { %313 = vsyncpa [#allocation5], 1 }

</bundles_post_ra>
